<compile_context>
chip_gen: v5e
topology: v5e:2x2
jax: 0.10.0
libtpu: 0.0.40
codegen_flags: <defaults>
</compile_context>

<pallas_src>
import jax
import jax.numpy as jnp
from jax.experimental import pallas as pl
from jax.experimental.pallas import tpu as pltpu


_NEG_BIG = -1e30  # finite "minus infinity" bias for padded vocab columns


def _round_up(a, b):
    return (a + b - 1) // b * b


# ----------------------------------------------------------------------------
# Single-pass fused Linear + LogSoftmax.
# Grid = (rows, vocab); vocab is the reduction axis ("arbitrary").  The output
# slab block (tm, V) is resident across the vocab axis; raw logits land in it
# tile by tile and the final step normalizes the whole slab in place.
# ----------------------------------------------------------------------------
def _fused_kernel(x_ref, w_ref, b_ref, o_ref, m_sc, l_sc):
    j = pl.program_id(1)
    tv = w_ref.shape[1]

    @pl.when(j == 0)
    def _init():
        m_sc[...] = jnp.full_like(m_sc, -jnp.inf)
        l_sc[...] = jnp.zeros_like(l_sc)

    # bf16 operands, f32 accumulation on the MXU; f32 epilogue (v5e-safe).
    logits = jnp.dot(x_ref[...], w_ref[...],
                     preferred_element_type=jnp.float32) + b_ref[...]

    # Stash raw logits in the resident output slab (lane-aligned dynamic slice).
    col0 = pl.multiple_of(j * tv, 128)
    o_ref[:, pl.ds(col0, tv)] = logits

    # Online max / sum-exp (flash-style).
    m_prev = m_sc[...]
    m_new = jnp.maximum(m_prev, jnp.max(logits, axis=-1, keepdims=True))
    l_sc[...] = (jnp.exp(m_prev - m_new) * l_sc[...]
                 + jnp.sum(jnp.exp(logits - m_new), axis=-1, keepdims=True))
    m_sc[...] = m_new

    @pl.when(j == pl.num_programs(1) - 1)
    def _finalize():
        lse = m_sc[...] + jnp.log(l_sc[...])
        o_ref[...] = o_ref[...] - lse


# ----------------------------------------------------------------------------
# Two-pass fallback, pass 1: per-row logsumexp of (x @ W + b) over vocab tiles.
# ----------------------------------------------------------------------------
def _lse_kernel(x_ref, w_ref, b_ref, lse_ref, m_sc, l_sc):
    j = pl.program_id(1)

    @pl.when(j == 0)
    def _init():
        m_sc[...] = jnp.full_like(m_sc, -jnp.inf)
        l_sc[...] = jnp.zeros_like(l_sc)

    logits = jnp.dot(x_ref[...], w_ref[...],
                     preferred_element_type=jnp.float32) + b_ref[...]

    m_prev = m_sc[...]
    m_new = jnp.maximum(m_prev, jnp.max(logits, axis=-1, keepdims=True))
    l_sc[...] = (jnp.exp(m_prev - m_new) * l_sc[...]
                 + jnp.sum(jnp.exp(logits - m_new), axis=-1, keepdims=True))
    m_sc[...] = m_new

    @pl.when(j == pl.num_programs(1) - 1)
    def _finalize():
        lse_ref[...] = m_sc[...] + jnp.log(l_sc[...])


# ----------------------------------------------------------------------------
# Two-pass fallback, pass 2: out = (x @ W + b) - logsumexp.  Every (tm, tv)
# tile is independent, so both grid axes are "parallel".
# ----------------------------------------------------------------------------
def _finalize_kernel(x_ref, w_ref, b_ref, lse_ref, o_ref):
    logits = jnp.dot(x_ref[...], w_ref[...],
                     preferred_element_type=jnp.float32) + b_ref[...]
    o_ref[...] = (logits - lse_ref[...]).astype(o_ref.dtype)


def mlm_head(x, w, b, *, tm_max=256, tv_max=2048,
             single_pass_vmem_budget=12 * 1024 * 1024,
             compute_dtype=jnp.bfloat16, out_dtype=jnp.float32):
    """Fused Linear + LogSoftmax.

    x: (M, H) activations, w: (H, V) (torch Linear weight transposed),
    b: (V,) bias.  Returns (M, V) log-probabilities in `out_dtype`.
    """
    M, H = x.shape
    Hw, V = w.shape
    assert H == Hw and b.shape == (V,)

    # Tile sizes: large row tile to keep the MXU full, lane-aligned vocab tile.
    tm = min(tm_max, _round_up(M, 8))
    tv = min(tv_max, _round_up(V, 128))
    m_pad = _round_up(M, tm)
    v_pad = _round_up(V, tv)
    nm, nv = m_pad // tm, v_pad // tv

    xc = x.astype(compute_dtype)
    wc = w.astype(compute_dtype)
    bf = b.astype(jnp.float32).reshape(1, V)
    if m_pad != M:
        # Padded rows compute finite (garbage) log-probs and are sliced off.
        xc = jnp.pad(xc, ((0, m_pad - M), (0, 0)))
    if v_pad != V:
        wc = jnp.pad(wc, ((0, 0), (0, v_pad - V)))
        # Huge negative bias on padded vocab columns => exp() underflows to 0,
        # so they do not perturb the logsumexp; sliced off at the end.
        bf = jnp.pad(bf, ((0, 0), (0, v_pad - V)), constant_values=_NEG_BIG)

    x_spec = pl.BlockSpec((tm, H), lambda i, j: (i, 0))
    w_spec = pl.BlockSpec((H, tv), lambda i, j: (0, j))
    b_spec = pl.BlockSpec((1, tv), lambda i, j: (0, j))
    lse_spec = pl.BlockSpec((tm, 1), lambda i, j: (i, 0))

    # VMEM estimate for the single-pass path: double-buffered output slab
    # (it is the logits scratch) + double-buffered input streams.
    itemsize = jnp.dtype(compute_dtype).itemsize
    slab_bytes = 2 * tm * v_pad * 4
    stream_bytes = 2 * (tm * H + H * tv) * itemsize + 2 * tv * 4
    use_single_pass = (jnp.dtype(out_dtype) == jnp.dtype(jnp.float32)
                      and slab_bytes + stream_bytes <= single_pass_vmem_budget)

    if use_single_pass:
        # ---- single pass: one matmul, W streamed once per row tile ----------
        out = pl.pallas_call(
            _fused_kernel,
            out_shape=jax.ShapeDtypeStruct((m_pad, v_pad), jnp.float32),
            grid_spec=pltpu.PrefetchScalarGridSpec(
                num_scalar_prefetch=0,
                grid=(nm, nv),
                in_specs=[x_spec, w_spec, b_spec],
                out_specs=pl.BlockSpec((tm, v_pad), lambda i, j: (i, 0)),
                scratch_shapes=[pltpu.VMEM((tm, 1), jnp.float32),   # running max
                                pltpu.VMEM((tm, 1), jnp.float32)],  # running sum-exp
            ),
            compiler_params=pltpu.CompilerParams(
                dimension_semantics=("parallel", "arbitrary")),
        )(xc, wc, bf)
        if m_pad != M or v_pad != V:
            out = out[:M, :V]
        return out

    # ---- pass 1: per-row logsumexp (vocab axis = reduction) -----------------
    lse = pl.pallas_call(
        _lse_kernel,
        out_shape=jax.ShapeDtypeStruct((m_pad, 1), jnp.float32),
        grid_spec=pltpu.PrefetchScalarGridSpec(
            num_scalar_prefetch=0,
            grid=(nm, nv),
            in_specs=[x_spec, w_spec, b_spec],
            out_specs=lse_spec,
            scratch_shapes=[pltpu.VMEM((tm, 1), jnp.float32),
                            pltpu.VMEM((tm, 1), jnp.float32)],
        ),
        compiler_params=pltpu.CompilerParams(
            dimension_semantics=("parallel", "arbitrary")),
    )(xc, wc, bf)

    # ---- pass 2: normalized log-probs, lane-dense (tm, tv) output tiles -----
    # Grid order minimizes HBM re-streaming: with vocab outer, each (H, tv)
    # weight tile is fetched once and reused over all row tiles, while the
    # (much smaller) activations are re-fetched nv times.
    vocab_outer = tv >= tm
    if vocab_outer:
        grid2 = (nv, nm)
        in_specs2 = [pl.BlockSpec((tm, H), lambda j, i: (i, 0)),
                     pl.BlockSpec((H, tv), lambda j, i: (0, j)),
                     pl.BlockSpec((1, tv), lambda j, i: (0, j)),
                     pl.BlockSpec((tm, 1), lambda j, i: (i, 0))]
        out_spec2 = pl.BlockSpec((tm, tv), lambda j, i: (i, j))
    else:
        grid2 = (nm, nv)
        in_specs2 = [x_spec, w_spec, b_spec, lse_spec]
        out_spec2 = pl.BlockSpec((tm, tv), lambda i, j: (i, j))

    out = pl.pallas_call(
        _finalize_kernel,
        out_shape=jax.ShapeDtypeStruct((m_pad, v_pad), out_dtype),
        grid_spec=pltpu.PrefetchScalarGridSpec(
            num_scalar_prefetch=0,
            grid=grid2,
            in_specs=in_specs2,
            out_specs=out_spec2,
        ),
        compiler_params=pltpu.CompilerParams(
            dimension_semantics=("parallel", "parallel")),
    )(xc, wc, bf, lse)

    if m_pad != M or v_pad != V:
        out = out[:M, :V]
    return out


# ----------------------------------------------------------------------------
# Synthetic "bert_model": token embedding + segment embedding (plain JAX glue).
# ----------------------------------------------------------------------------
def synthetic_bert(inputs_ids, segm_ids, tok_emb, seg_emb):
    # TODO(synk): the real bert_model is an injected external module; a full
    #             BERT encoder is out of scope for this synthetic kernel.
    return tok_emb[inputs_ids] + seg_emb[segm_ids]


def mlm_model_forward(inputs_ids, segm_ids, params, **head_kwargs):
    """Full MLMModel forward: synthetic bert -> Pallas fused linear+logsoftmax."""
    B, S = inputs_ids.shape
    sentence_embed = synthetic_bert(
        inputs_ids, segm_ids, params["tok_emb"], params["seg_emb"]
    )                                                    # (B, S, H)
    H = sentence_embed.shape[-1]
    V = params["w"].shape[1]
    log_probs = mlm_head(sentence_embed.reshape(B * S, H),
                         params["w"], params["b"], **head_kwargs)  # (B*S, V)
    return log_probs.reshape(B, S, V)


if __name__ == "__main__":
    # small shapes consistent with the module
    B, S = 2, 8          # batch, sequence length
    H = 32               # hidden_dim
    V = 128              # vocab_size
    N_SEG = 2            # segment vocabulary

    key = jax.random.PRNGKey(0)
    k_tok, k_seg, k_w, k_b, k_ids, k_segids = jax.random.split(key, 6)

    params = {
        "tok_emb": jax.random.normal(k_tok, (V, H), dtype=jnp.float32) * 0.02,
        "seg_emb": jax.random.normal(k_seg, (N_SEG, H), dtype=jnp.float32) * 0.02,
        # torch Linear(hidden, vocab): weight (V, H); stored here transposed (H, V)
        "w": jax.random.normal(k_w, (H, V), dtype=jnp.float32) * 0.02,
        "b": jax.random.normal(k_b, (V,), dtype=jnp.float32) * 0.02,
    }

    inputs_ids = jax.random.randint(k_ids, (B, S), 0, V, dtype=jnp.int32)
    segm_ids = jax.random.randint(k_segids, (B, S), 0, N_SEG, dtype=jnp.int32)

    # --- default path (single-pass fused kernel at these shapes) -------------
    out = mlm_model_forward(inputs_ids, segm_ids, params)
    out = jax.block_until_ready(out)
    assert out.shape == (B, S, V)

    # Reference with the same bf16 matmul inputs / f32 accumulation as the kernel.
    x_ref = (params["tok_emb"][inputs_ids]
             + params["seg_emb"][segm_ids]).reshape(B * S, H)
    logits_bf = jnp.dot(x_ref.astype(jnp.bfloat16),
                        params["w"].astype(jnp.bfloat16),
                        preferred_element_type=jnp.float32) + params["b"]
    ref_bf = jax.nn.log_softmax(logits_bf, axis=-1).reshape(B, S, V)
    assert jnp.allclose(out, ref_bf, atol=1e-4, rtol=1e-4), \
        float(jnp.max(jnp.abs(out - ref_bf)))

    # Loose sanity check against the full-f32 reference as well.
    logits_f32 = x_ref @ params["w"] + params["b"]
    ref_f32 = jax.nn.log_softmax(logits_f32, axis=-1).reshape(B, S, V)
    assert jnp.allclose(out, ref_f32, atol=5e-3, rtol=5e-3)

    # --- force the large-vocab two-pass path and check it as well ------------
    out2 = mlm_model_forward(inputs_ids, segm_ids, params,
                             single_pass_vmem_budget=0)
    out2 = jax.block_until_ready(out2)
    assert out2.shape == (B, S, V)
    assert jnp.allclose(out2, ref_bf, atol=1e-4, rtol=1e-4), \
        float(jnp.max(jnp.abs(out2 - ref_bf)))

    print("KERNEL_OK")
</pallas_src>

<mosaic_0001>
module attributes {stable_mosaic.version = 11 : i64} {
  func.func @_fused_kernel(%arg0: i32, %arg1: i32, %arg2: memref<16x32xbf16, #tpu.memory_space<vmem>>, %arg3: memref<32x128xbf16, #tpu.memory_space<vmem>>, %arg4: memref<1x128xf32, #tpu.memory_space<vmem>>, %arg5: memref<16x128xf32, #tpu.memory_space<vmem>>, %arg6: memref<16x1xf32, #tpu.memory_space<vmem>>, %arg7: memref<16x1xf32, #tpu.memory_space<vmem>>) attributes {dimension_semantics = [#tpu.dimension_semantics<parallel>, #tpu.dimension_semantics<arbitrary>], iteration_bounds = array<i64: 1, 1>, scalar_prefetch = 0 : i64, scratch_operands = 2 : i64, tpu.core_type = #tpu.core_type<tc>, window_params = [{transform_indices = @transform_0, window_bounds = array<i64: 16, 32>}, {transform_indices = @transform_1, window_bounds = array<i64: 32, 128>}, {transform_indices = @transform_2, window_bounds = array<i64: 1, 128>}, {transform_indices = @transform_3, window_bounds = array<i64: 16, 128>}]} {
    %c0_i32 = arith.constant 0 : i32
    %0 = arith.cmpi eq, %arg1, %c0_i32 : i32
    %1 = arith.extui %0 : i1 to i32
    %c0_i32_0 = arith.constant 0 : i32
    %2 = arith.cmpi ne, %1, %c0_i32_0 : i32
    scf.if %2 {
      %cst_19 = arith.constant 0xFF800000 : f32
      %32 = vector.broadcast %cst_19 : f32 to vector<16x1xf32>
      %c0_20 = arith.constant 0 : index
      %c0_21 = arith.constant 0 : index
      %33 = vector.load %arg6[%c0_20, %c0_21] : memref<16x1xf32, #tpu.memory_space<vmem>>, vector<16x1xf32>
      tpu.vector_store %arg6[%c0_20, %c0_21], %32 {strides = array<i32>} : memref<16x1xf32, #tpu.memory_space<vmem>>, vector<16x1xf32>,
      %cst_22 = arith.constant 0.000000e+00 : f32
      %34 = vector.broadcast %cst_22 : f32 to vector<16x1xf32>
      %c0_23 = arith.constant 0 : index
      %c0_24 = arith.constant 0 : index
      %35 = vector.load %arg7[%c0_23, %c0_24] : memref<16x1xf32, #tpu.memory_space<vmem>>, vector<16x1xf32>
      tpu.vector_store %arg7[%c0_23, %c0_24], %34 {strides = array<i32>} : memref<16x1xf32, #tpu.memory_space<vmem>>, vector<16x1xf32>,
    } else {
    }
    %c0 = arith.constant 0 : index
    %c0_1 = arith.constant 0 : index
    %3 = vector.load %arg2[%c0, %c0_1] : memref<16x32xbf16, #tpu.memory_space<vmem>>, vector<16x32xbf16>
    %c0_2 = arith.constant 0 : index
    %c0_3 = arith.constant 0 : index
    %4 = vector.load %arg3[%c0_2, %c0_3] : memref<32x128xbf16, #tpu.memory_space<vmem>>, vector<32x128xbf16>
    %cst = arith.constant dense<0.000000e+00> : vector<16x128xf32>
    %5 = tpu.matmul %3, %4, %cst {dimension_numbers = #tpu.dot_dimension_numbers<[1], [0], [0], [1], [0, 0, 1, 1], [], []>} : vector<16x32xbf16>, vector<32x128xbf16>, vector<16x128xf32> -> vector<16x128xf32>
    %c0_4 = arith.constant 0 : index
    %c0_5 = arith.constant 0 : index
    %6 = vector.load %arg4[%c0_4, %c0_5] : memref<1x128xf32, #tpu.memory_space<vmem>>, vector<1x128xf32>
    %7 = vector.broadcast %6 : vector<1x128xf32> to vector<16x128xf32>
    %8 = arith.addf %5, %7 : vector<16x128xf32>
    %c128_i32 = arith.constant 128 : i32
    %9 = arith.muli %arg1, %c128_i32 : i32
    %10 = tpu.assume_multiple %9, 128 : i32
    %c0_6 = arith.constant 0 : index
    %11 = arith.index_cast %10 : i32 to index
    %12 = vector.load %arg5[%c0_6, %11] : memref<16x128xf32, #tpu.memory_space<vmem>>, vector<16x128xf32>
    tpu.vector_store %arg5[%c0_6, %11], %8 {strides = array<i32>} : memref<16x128xf32, #tpu.memory_space<vmem>>, vector<16x128xf32>,
    %c0_7 = arith.constant 0 : index
    %c0_8 = arith.constant 0 : index
    %13 = vector.load %arg6[%c0_7, %c0_8] : memref<16x1xf32, #tpu.memory_space<vmem>>, vector<16x1xf32>
    %cst_9 = arith.constant dense<0xFF800000> : vector<16xf32>
    %14 = vector.multi_reduction <maximumf>, %8, %cst_9 [1] : vector<16x128xf32> to vector<16xf32>
    %15 = vector.shape_cast %14 : vector<16xf32> to vector<16x1xf32>
    %16 = arith.maximumf %13, %15 : vector<16x1xf32>
    %17 = arith.subf %13, %16 : vector<16x1xf32>
    %18 = math.exp %17 : vector<16x1xf32>
    %c0_10 = arith.constant 0 : index
    %c0_11 = arith.constant 0 : index
    %19 = vector.load %arg7[%c0_10, %c0_11] : memref<16x1xf32, #tpu.memory_space<vmem>>, vector<16x1xf32>
    %20 = arith.mulf %18, %19 : vector<16x1xf32>
    %21 = vector.broadcast %16 : vector<16x1xf32> to vector<16x128xf32>
    %22 = arith.subf %8, %21 : vector<16x128xf32>
    %23 = math.exp %22 : vector<16x128xf32>
    %cst_12 = arith.constant dense<0.000000e+00> : vector<16xf32>
    %24 = vector.multi_reduction <add>, %23, %cst_12 [1] : vector<16x128xf32> to vector<16xf32>
    %25 = vector.shape_cast %24 : vector<16xf32> to vector<16x1xf32>
    %26 = arith.addf %20, %25 : vector<16x1xf32>
    %c0_13 = arith.constant 0 : index
    %c0_14 = arith.constant 0 : index
    %27 = vector.load %arg7[%c0_13, %c0_14] : memref<16x1xf32, #tpu.memory_space<vmem>>, vector<16x1xf32>
    tpu.vector_store %arg7[%c0_13, %c0_14], %26 {strides = array<i32>} : memref<16x1xf32, #tpu.memory_space<vmem>>, vector<16x1xf32>,
    %c0_15 = arith.constant 0 : index
    %c0_16 = arith.constant 0 : index
    %28 = vector.load %arg6[%c0_15, %c0_16] : memref<16x1xf32, #tpu.memory_space<vmem>>, vector<16x1xf32>
    tpu.vector_store %arg6[%c0_15, %c0_16], %16 {strides = array<i32>} : memref<16x1xf32, #tpu.memory_space<vmem>>, vector<16x1xf32>,
    %c0_i32_17 = arith.constant 0 : i32
    %29 = arith.cmpi eq, %arg1, %c0_i32_17 : i32
    %30 = arith.extui %29 : i1 to i32
    %c0_i32_18 = arith.constant 0 : i32
    %31 = arith.cmpi ne, %30, %c0_i32_18 : i32
    scf.if %31 {
      %c0_19 = arith.constant 0 : index
      %c0_20 = arith.constant 0 : index
      %32 = vector.load %arg6[%c0_19, %c0_20] : memref<16x1xf32, #tpu.memory_space<vmem>>, vector<16x1xf32>
      %c0_21 = arith.constant 0 : index
      %c0_22 = arith.constant 0 : index
      %33 = vector.load %arg7[%c0_21, %c0_22] : memref<16x1xf32, #tpu.memory_space<vmem>>, vector<16x1xf32>
      %34 = math.log %33 : vector<16x1xf32>
      %35 = arith.addf %32, %34 : vector<16x1xf32>
      %c0_23 = arith.constant 0 : index
      %c0_24 = arith.constant 0 : index
      %36 = vector.load %arg5[%c0_23, %c0_24] : memref<16x128xf32, #tpu.memory_space<vmem>>, vector<16x128xf32>
      %37 = vector.broadcast %35 : vector<16x1xf32> to vector<16x128xf32>
      %38 = arith.subf %36, %37 : vector<16x128xf32>
      %c0_25 = arith.constant 0 : index
      %c0_26 = arith.constant 0 : index
      %39 = vector.load %arg5[%c0_25, %c0_26] : memref<16x128xf32, #tpu.memory_space<vmem>>, vector<16x128xf32>
      tpu.vector_store %arg5[%c0_25, %c0_26], %38 {strides = array<i32>} : memref<16x128xf32, #tpu.memory_space<vmem>>, vector<16x128xf32>,
    } else {
    }
    return
  }
  func.func @transform_0(%arg0: i32, %arg1: i32) -> (i32, i32) {
    %c0_i32 = arith.constant 0 : i32
    %c0_i32_0 = arith.constant 0 : i32
    return %arg0, %c0_i32 : i32, i32
  }
  func.func @transform_1(%arg0: i32, %arg1: i32) -> (i32, i32) {
    %c0_i32 = arith.constant 0 : i32
    %c0_i32_0 = arith.constant 0 : i32
    return %c0_i32, %arg1 : i32, i32
  }
  func.func @transform_2(%arg0: i32, %arg1: i32) -> (i32, i32) {
    %c0_i32 = arith.constant 0 : i32
    %c0_i32_0 = arith.constant 0 : i32
    return %c0_i32, %arg1 : i32, i32
  }
  func.func @transform_3(%arg0: i32, %arg1: i32) -> (i32, i32) {
    %c0_i32 = arith.constant 0 : i32
    %c0_i32_0 = arith.constant 0 : i32
    return %arg0, %c0_i32 : i32, i32
  }
}

</mosaic_0001>

<bundles_post_ra>
// kernel: tpu_custom_call.1
= control target key start
LH: loop header
LB: loop body
LE: loop exit
PB: predicated region body
PF: predicated region fallthrough
CT: control target
= control target key end

     0   :  { %8 = vsyncpa [#allocation5], 0  ;;  %s382_s0 = inlined_call_operand.hbm [shape: bf16[16,32], index: 0, kind: input, shape index: {}]   ;;  %s383_s1 = inlined_call_operand.hbm [shape: bf16[32,128], index: 1, kind: input, shape index: {}]   ;;  %s384_s2 = inlined_call_operand.vmem [shape: f32[1,128], index: 2, kind: input, shape index: {}]   ;;  %s385_s3 = inlined_call_operand.hbm [shape: f32[16,128], index: 3, kind: output, shape index: {}]  }
   0x1   :  { %9 = vsyncpa [#allocation8], 0 }
   0x2   :  { %10 = vsyncpa [#allocation6], 0  ;;  %s15_s14 = sshll.u32 %s382_s0, 4  ;;  %s322_s15 = smov [#allocation4]   ;;  %s16_s14 = int_to_ptr.hbm [resolvable:$true] %s15_s14 }
   0x3   :  { %s17_s16 = sshll.u32 %s322_s15, 4  ;;  %s28_s19 = sshll.u32 %s383_s1, 4  ;;  %s18_s16 = int_to_ptr.vmem [resolvable:$true] %s17_s16  ;;  %s29_s19 = int_to_ptr.hbm [resolvable:$true] %s28_s19 }
   0x4   :  { %s323_s20 = smov 64   ;;  %s324_s21 = smov 4  }
   0x5   :  { %23 = dma.hbm_to_vmem [thread:$0]  %s16_s14, 128, %s18_s16, [#allocation5], %s323_s20, %s323_s20, %s324_s21  }
   0x6   :  { %s325_s22 = smov [#allocation7]  }
   0x7   :  { %s30_s23 = sshll.u32 %s325_s22, 4  ;;  %s31_s23 = int_to_ptr.vmem [resolvable:$true] %s30_s23 }
   0x8   :  { %36 = dma.hbm_to_vmem [thread:$0]  %s29_s19, 256, %s31_s23, [#allocation8], %s323_s20, %s323_s20, %s324_s21  }
   0x9   :  { %316 = dma.done.wait [#allocation5], 128  }
   0xa   :  { %317 = vsyncadd [#allocation5], 4294967168 }
   0xb   :  { %318 = dma.done.wait [#allocation8], 256  }
   0xc   :  { %319 = vsyncadd [#allocation8], 4294967040  ;;  %v218_v0 = vld [vmem:[#allocation7 + $0x8] sm:$0xff]  ;;  %v217_v1 = vld [vmem:[#allocation7] sm:$0xff]  ;;  %vm84_vm0 = vcmask 261120   ;;  %vm52_vm1 = vcmask 7168  }
   0xd   :  { %94 = vmatpush.bf16.msra.mxu0 %v218_v0  ;;  %v216_v2 = vld [vmem:[#allocation4] sm:$0xff]  ;;  %v326_v3 = vmov -inf   ;;  %v327_v9 = vmov 0   ;;  %v328_v10 = vmov 0.0   ;;  %s188_s27 = sshll.u32 %s385_s3, 4  ;;  %s330_s28 = smov 128   ;;  %s189_s27 = int_to_ptr.hbm [resolvable:$true] %s188_s27 }
   0xe   :  { %53 = vst.msk [vmem:[#allocation2] sm:$0xff] %vm52_vm1, %v326_v3  ;;  %v231_v4 = vld [vmem:[%s384_s2] ss:$0 sm:$0xff]  ;;  %229 = vset.pattern.permute.xlu1 %v327_v9  ;;  %230 = vset.pattern.permute.xlu0 %v327_v9  ;;  %s329_s2 = smov [#allocation9]   ;;  %s331_s29 = smov 8  }
   0xf   :  { %54 = vst.msk [vmem:[#allocation2 + $0x8] sm:$0xff] %vm52_vm1, %v326_v3  ;;  %s186_s24 = sshll.u32 %s329_s2, 4  ;;  %s187_s24 = int_to_ptr.vmem [resolvable:$true] %s186_s24 }
  0x10   :  { %55 = vst.msk [vmem:[#allocation3] sm:$0xff] %vm52_vm1, %v328_v10 }
  0x11   :  { %95 = vmatpush.bf16.msra.mxu0 %v217_v1  ;;  %56 = vst.msk [vmem:[#allocation3 + $0x8] sm:$0xff] %vm52_vm1, %v328_v10 }
  0x14   :  { %215 = vmatmul.msk.bf16.vlgmr.msra.gmra.mxu0 %vm84_vm0, %v216_v2 }
  0x15   :  { %v108_v11 = vld [vmem:[#allocation2] sm:$0xff] }
  0x16   :  { %v109_v15 = vld [vmem:[#allocation2 + $0x8] sm:$0xff] }
  0x17   :  { %v122_v30 = vld [vmem:[#allocation3] sm:$0xff] }
  0x18   :  { %v123_v35 = vld [vmem:[#allocation3 + $0x8] sm:$0xff] }
  0x91   :  { %v97_v5 = vpop.f32.mrf.mxu0 }
  0x92   :  { %v363_v6 = vadd.f32 %v231_v4, %v97_v5 }
  0x94   :  { %110 = vmax.xlane.f32.xlu0 %v363_v6 }
  0x99   :  { %v99_v7 = vpop.f32.mrf.mxu0 }
  0x9a   :  { %v366_v8 = vadd.f32 %v231_v4, %v99_v7 }
  0x9c   :  { %112 = vmax.xlane.f32.xlu0 %v366_v8 }
 0x107   :  { %v111_v12 = vpop.xlane.xlu0 %110 }
 0x108   :  { %v114_v13 = vmax.f32 %v108_v11, %v111_v12 }
 0x10a   :  { %v116_v14 = vsub.f32 %v108_v11, %v114_v13  ;;  %151 = vst.msk [vmem:[#allocation2] sm:$0xff] %vm52_vm1, %v114_v13  ;;  %128 = vperm.xlu1 %229, %v114_v13  }
 0x10c   :  { %v118_v27 = vmul.f32 1.442695, %v116_v14 }
 0x10f   :  { %v113_v16 = vpop.xlane.xlu0 %112 }
 0x110   :  { %v115_v17 = vmax.f32 %v109_v15, %v113_v16 }
 0x111   :  { %v156_v43 = vld [vmem:[#allocation2] sm:$0xff] }
 0x112   :  { %v117_v18 = vsub.f32 %v109_v15, %v115_v17  ;;  %152 = vst.msk [vmem:[#allocation2 + $0x8] sm:$0xff] %vm52_vm1, %v115_v17  ;;  %133 = vperm.xlu1 %229, %v115_v17  }
 0x114   :  { %v120_v28 = vmul.f32 1.442695, %v117_v18 }
 0x119   :  { %v157_v47 = vld [vmem:[#allocation2 + $0x8] sm:$0xff] }
 0x17c   :  { %v129_v19 = vpop.permute.xlu1 %128 }
 0x17d   :  { %v136_v20 = vsub.f32 %v363_v6, %v129_v19 }
 0x17f   :  { %v138_v21 = vmul.f32 1.442695, %v136_v20 }
 0x181   :  { %232 = vpow2.f32 %v138_v21 }
 0x184   :  { %v134_v22 = vpop.permute.xlu1 %133 }
 0x185   :  { %v137_v23 = vsub.f32 %v366_v8, %v134_v22 }
 0x187   :  { %v233_v24 = vpop.eup %232  ;;  %v140_v25 = vmul.f32 1.442695, %v137_v23 }
 0x188   :  { %142 = vadd.xlane.f32.xlu2 %v233_v24 }
 0x189   :  { %234 = vpow2.f32 %v140_v25 }
 0x18a   :  { %236 = vpow2.f32 %v118_v27 }
 0x18b   :  { %238 = vpow2.f32 %v120_v28 }
 0x18f   :  { %v235_v26 = vpop.eup %234 }
 0x190   :  { %144 = vadd.xlane.f32.xlu2 %v235_v26  ;;  %v237_v29 = vpop.eup %236 }
 0x191   :  { %v124_v31 = vmul.f32 %v237_v29, %v122_v30  ;;  %v239_v34 = vpop.eup %238 }
 0x192   :  { %v125_v36 = vmul.f32 %v239_v34, %v123_v35 }
 0x1fb   :  { %v143_v32 = vpop.xlane.xlu2 %142 }
 0x1fc   :  { %v146_v33 = vadd.f32 %v143_v32, %v124_v31 }
 0x1fe   :  { %149 = vst.msk [vmem:[#allocation3] sm:$0xff] %vm52_vm1, %v146_v33 }
 0x203   :  { %v145_v37 = vpop.xlane.xlu2 %144 }
 0x204   :  { %v147_v38 = vadd.f32 %v145_v37, %v125_v36 }
 0x205   :  { %v158_v39 = vld [vmem:[#allocation3] sm:$0xff] }
 0x206   :  { %150 = vst.msk [vmem:[#allocation3 + $0x8] sm:$0xff] %vm52_vm1, %v147_v38  ;;  %240 = vlog2.f32 %v158_v39 }
 0x20c   :  { %v241_v40 = vpop.eup %240 }
 0x20d   :  { %v161_v41 = vmul.f32 0.6931472, %v241_v40  ;;  %v159_v42 = vld [vmem:[#allocation3 + $0x8] sm:$0xff] }
 0x20e   :  { %242 = vlog2.f32 %v159_v42 }
 0x20f   :  { %v164_v44 = vadd.f32 %v161_v41, %v156_v43 }
 0x211   :  { %170 = vperm.xlu0 %230, %v164_v44  }
 0x214   :  { %v243_v45 = vpop.eup %242 }
 0x215   :  { %v163_v46 = vmul.f32 0.6931472, %v243_v45 }
 0x217   :  { %v165_v48 = vadd.f32 %v163_v46, %v157_v47 }
 0x219   :  { %175 = vperm.xlu1 %229, %v165_v48  }
 0x283   :  { %v171_v49 = vpop.permute.xlu0 %170 }
 0x284   :  { %v178_v50 = vsub.f32 %v363_v6, %v171_v49 }
 0x286   :  { %180 = vst [vmem:[#allocation9] sm:$0xff] %v178_v50 }
 0x28b   :  { %v176_v51 = vpop.permute.xlu1 %175 }
 0x28c   :  { %v179_v52 = vsub.f32 %v366_v8, %v176_v51 }
 0x28e   :  { %181 = vst [vmem:[#allocation9 + $0x8] sm:$0xff] %v179_v52 }
 0x28f   :  { %194 = dma.vmem_to_hbm [thread:$0]  %s187_s24, 256, %s189_s27, [#allocation6], %s330_s28, %s330_s28, %s331_s29  }
 0x290   :  { %320 = dma.done.wait [#allocation6], 256  }
 0x291   :  { %321 = vsyncadd [#allocation6], 4294967040 }
 0x292   :  { %199 = vsyncpa [#allocation5], 1 }
 0x293   :  { %200 = vsyncpa [#allocation8], 1 }
 0x294   :  { %201 = vsyncpa [#allocation6], 1 }

</bundles_post_ra>
